<compile_context>
chip_gen: v7x
topology: tpu7x:2x2x1
jax: 0.10.0
libtpu: 0.0.40
codegen_flags: <defaults>
</compile_context>

<pallas_src>
import math
import functools

import jax
import jax.numpy as jnp
from jax import lax
from jax.experimental import pallas as pl
from jax.experimental.pallas import tpu as pltpu

# ----------------------------- configuration -------------------------------
SCALE = 30.0
MARGIN = 0.6
BN_EPS = 1e-5
COS_M = math.cos(MARGIN)
SIN_M = math.sin(MARGIN)
TH = math.cos(math.pi - MARGIN)
MM = math.sin(math.pi - MARGIN) * MARGIN
NEG_INF = -1e30  # large-finite instead of -inf to avoid inf-inf NaNs


# ------------------------------- kernel ------------------------------------
def _shopee_kernel(emb_ref, mask_ref, label_ref, wc_ref, bc_ref, warc_ref,
                   logits_ref, loss_ref,
                   xn_ref, m_ref, l_ref, t_ref,
                   *, n_classes):
    """Fused mean-pool + FC + BN + ArcFace + CE, tiled over the class dim.

    Grid axis 0 walks class tiles (size TC).  Per-tile inputs:
      warc_ref   : [F, TC] bf16   ArcFace weight tile (pre-transposed, padded)
      logits_ref : [B, TC] f32    scaled ArcFace logits tile (output)
    Resident (constant block index) inputs:
      emb_ref  [B,S,H] bf16, mask_ref [B,S] f32, label_ref [B,1] i32,
      wc_ref   [H,F]   f32,  bc_ref   [1,F] f32
    Scratch (persistent across tiles):
      xn_ref [B,F] bf16 (L2-normalized features), m/l/t [B,1] f32 (online LSE).
    """
    c_idx = pl.program_id(0)
    n_tiles = pl.num_programs(0)
    batch = logits_ref.shape[0]
    tc = logits_ref.shape[1]

    # ---- prologue (first class tile only): pool + FC + BN + normalize ----
    @pl.when(c_idx == 0)
    def _prologue():
        emb = emb_ref[...].astype(jnp.float32)                  # (B, S, H)
        mask = mask_ref[...]                                    # (B, S)
        masked = emb * mask[:, :, None]
        sum_emb = jnp.sum(masked, axis=1)                       # (B, H)
        sum_mask = jnp.maximum(jnp.sum(mask, axis=1, keepdims=True), 1e-9)
        x = sum_emb / sum_mask                                  # (B, H)

        # dropout(p=0.0) is identity; classifier Linear
        x = jnp.dot(x, wc_ref[...],
                    preferred_element_type=jnp.float32) + bc_ref[...]  # (B, F)

        # BatchNorm1d, training mode (biased batch stats, gamma=1, beta=0)
        mu = jnp.mean(x, axis=0, keepdims=True)
        var = jnp.mean((x - mu) * (x - mu), axis=0, keepdims=True)
        x = (x - mu) * lax.rsqrt(var + BN_EPS)                  # (B, F)

        # F.normalize(input) rows (eps matches torch 1e-12 on the norm)
        x_n = x * lax.rsqrt(
            jnp.maximum(jnp.sum(x * x, axis=1, keepdims=True), 1e-24))
        xn_ref[...] = x_n.astype(xn_ref.dtype)                  # bf16 for MXU

        m_ref[...] = jnp.full_like(m_ref, NEG_INF)
        l_ref[...] = jnp.zeros_like(l_ref)
        t_ref[...] = jnp.zeros_like(t_ref)

    # ---- per class tile: cosine + angular margin ---------------------------
    # F.normalize(W) rows then matmul == matmul with raw W then scale each
    # class column by 1/||w_c||.  Scaling the (B, TC) result instead of the
    # (F, TC) weight tile is F/B x fewer VPU ops and skips an f32->bf16 cast.
    w = warc_ref[...]                                           # (F, TC) bf16
    wsq = jnp.sum(w.astype(jnp.float32) * w.astype(jnp.float32),
                  axis=0, keepdims=True)                        # (1, TC)
    inv_wn = lax.rsqrt(jnp.maximum(wsq, 1e-24))
    raw = jnp.dot(xn_ref[...], w,
                  preferred_element_type=jnp.float32)           # (B, TC)
    cosine = raw * inv_wn

    sine = jnp.sqrt(jnp.maximum(1.0 - cosine * cosine, 0.0))
    phi = cosine * COS_M - sine * SIN_M
    phi = jnp.where(cosine > TH, phi, cosine - MM)

    col = c_idx * tc + lax.broadcasted_iota(jnp.int32, cosine.shape, 1)
    is_target = col == label_ref[...]          # labels never hit padded cols
    out = jnp.where(is_target, phi, cosine) * SCALE             # (B, TC)
    logits_ref[...] = out

    # ---- online logsumexp over class tiles (padded cols masked out) ------
    valid = col < n_classes
    out_masked = jnp.where(valid, out, NEG_INF)
    m_prev = m_ref[...]
    m_new = jnp.maximum(m_prev, jnp.max(out_masked, axis=1, keepdims=True))
    alpha = jnp.exp(m_prev - m_new)
    l_ref[...] = alpha * l_ref[...] + jnp.sum(jnp.exp(out_masked - m_new),
                                              axis=1, keepdims=True)
    m_ref[...] = m_new
    t_ref[...] = t_ref[...] + jnp.sum(jnp.where(is_target, out, 0.0),
                                      axis=1, keepdims=True)

    # ---- epilogue (last class tile): mean cross-entropy -------------------
    @pl.when(c_idx == n_tiles - 1)
    def _epilogue():
        lse = m_ref[...] + jnp.log(l_ref[...])                  # (B, 1)
        per_row = lse - t_ref[...]                              # (B, 1)
        loss_ref[...] = jnp.sum(per_row, axis=0, keepdims=True) * (1.0 / batch)


# ------------------------------- wrapper ------------------------------------
@functools.partial(jax.jit, static_argnames=("class_tile",))
def shopee_forward(token_emb, attention_mask, labels, wc, bc, warc,
                   *, class_tile=1024):
    """Runs the fused ShopeeBertModel head.  Returns (logits, loss)."""
    B, S, H = token_emb.shape
    F_dim = wc.shape[1]
    C = warc.shape[1]

    # Lane-aligned class tile; pad C so every tile is (F, tc) / (B, tc).
    c_pad128 = pl.cdiv(C, 128) * 128
    tc = max(128, min((class_tile // 128) * 128, c_pad128))
    C_pad = pl.cdiv(C, tc) * tc
    n_tiles = C_pad // tc

    emb_bf16 = token_emb.astype(jnp.bfloat16)       # halves dominant HBM read
    mask_f32 = attention_mask.astype(jnp.float32)
    labels2d = labels.reshape(B, 1).astype(jnp.int32)
    wc_f32 = wc.astype(jnp.float32)
    bc_f32 = bc.reshape(1, F_dim).astype(jnp.float32)
    warc_bf16 = jnp.pad(warc.astype(jnp.bfloat16), ((0, 0), (0, C_pad - C)))

    kernel = functools.partial(_shopee_kernel, n_classes=C)

    # Rough VMEM budget: resident inputs + double-buffered warc/logits tiles
    # + persistent scratch, with headroom.  Stays well under v7x's 64 MiB.
    vmem_need = (B * S * H * 2 + B * S * 4 + B * 4
                 + H * F_dim * 4 + F_dim * 4
                 + 2 * F_dim * tc * 2          # warc tiles, bf16, 2 buffers
                 + 2 * B * tc * 4              # logits tiles, f32, 2 buffers
                 + B * F_dim * 2 + 3 * B * 4)  # scratch
    vmem_limit = int(min(max(2 * vmem_need, 16 * 1024 * 1024),
                         48 * 1024 * 1024))

    cost = pl.CostEstimate(
        flops=2 * B * H * F_dim + 2 * B * F_dim * C_pad,
        transcendentals=2 * B * C_pad,
        bytes_accessed=(emb_bf16.size * 2 + mask_f32.size * 4
                        + wc_f32.size * 4 + warc_bf16.size * 2
                        + B * C_pad * 4),
    )

    grid_spec = pltpu.PrefetchScalarGridSpec(
        num_scalar_prefetch=0,
        grid=(n_tiles,),
        in_specs=[
            pl.BlockSpec((B, S, H), lambda c: (0, 0, 0)),   # resident
            pl.BlockSpec((B, S), lambda c: (0, 0)),         # resident
            pl.BlockSpec((B, 1), lambda c: (0, 0)),         # resident
            pl.BlockSpec((H, F_dim), lambda c: (0, 0)),     # resident
            pl.BlockSpec((1, F_dim), lambda c: (0, 0)),     # resident
            pl.BlockSpec((F_dim, tc), lambda c: (0, c)),    # streamed over C
        ],
        out_specs=[
            pl.BlockSpec((B, tc), lambda c: (0, c)),        # logits tiles
            pl.BlockSpec((1, 1), lambda c: (0, 0)),         # loss (resident)
        ],
        scratch_shapes=[
            pltpu.VMEM((B, F_dim), jnp.bfloat16),           # x_n (MXU-ready)
            pltpu.VMEM((B, 1), jnp.float32),                # running max m
            pltpu.VMEM((B, 1), jnp.float32),                # running sum l
            pltpu.VMEM((B, 1), jnp.float32),                # target logit
        ],
    )

    logits_p, loss = pl.pallas_call(
        kernel,
        out_shape=(
            jax.ShapeDtypeStruct((B, C_pad), jnp.float32),
            jax.ShapeDtypeStruct((1, 1), jnp.float32),
        ),
        grid_spec=grid_spec,
        compiler_params=pltpu.CompilerParams(
            # C axis carries the online-LSE reduction state -> sequential.
            dimension_semantics=("arbitrary",),
            vmem_limit_bytes=vmem_limit,
        ),
        cost_estimate=cost,
    )(emb_bf16, mask_f32, labels2d, wc_f32, bc_f32, warc_bf16)

    return logits_p[:, :C], loss[0, 0]


# ------------------------ pure-JAX reference (check) ------------------------
def _reference(token_emb, attention_mask, labels, wc, bc, warc):
    emb = token_emb.astype(jnp.bfloat16).astype(jnp.float32)
    mask = attention_mask.astype(jnp.float32)
    x = (jnp.sum(emb * mask[:, :, None], axis=1)
         / jnp.maximum(jnp.sum(mask, axis=1, keepdims=True), 1e-9))
    x = x @ wc + bc.reshape(1, -1)
    mu = jnp.mean(x, axis=0, keepdims=True)
    var = jnp.mean((x - mu) ** 2, axis=0, keepdims=True)
    x = (x - mu) * lax.rsqrt(var + BN_EPS)
    x_n = x * lax.rsqrt(jnp.maximum(jnp.sum(x * x, axis=1, keepdims=True), 1e-24))
    w = warc.astype(jnp.bfloat16)
    inv_wn = lax.rsqrt(jnp.maximum(
        jnp.sum(warc * warc, axis=0, keepdims=True), 1e-24))
    cosine = jnp.dot(x_n.astype(jnp.bfloat16), w,
                     preferred_element_type=jnp.float32) * inv_wn
    sine = jnp.sqrt(jnp.maximum(1.0 - cosine * cosine, 0.0))
    phi = jnp.where(cosine > TH, cosine * COS_M - sine * SIN_M, cosine - MM)
    one_hot = jax.nn.one_hot(labels, cosine.shape[1], dtype=jnp.float32)
    out = (one_hot * phi + (1.0 - one_hot) * cosine) * SCALE
    lse = jax.scipy.special.logsumexp(out, axis=1)
    tgt = jnp.take_along_axis(out, labels[:, None], axis=1)[:, 0]
    return out, jnp.mean(lse - tgt)


# ------------------------------- main ---------------------------------------
if __name__ == "__main__":
    # Small, TPU-friendly synthetic shapes (real model: H=F=768, C=11014).
    B, S, H = 8, 8, 32          # batch, seq, backbone hidden
    FC = 32                     # fc_dim
    C = 300                     # n_classes: not a multiple of 128 on purpose
                                # (exercises padding + 3 class tiles at tc=128)

    key = jax.random.PRNGKey(0)
    k_emb, k_mask, k_lbl, k_wc, k_warc = jax.random.split(key, 5)

    # Backbone token embeddings + attention mask (first few tokens valid).
    token_emb = jax.random.normal(k_emb, (B, S, H), dtype=jnp.float32)
    valid_len = 1 + jax.random.randint(k_mask, (B,), 0, S)
    attention_mask = (jnp.arange(S)[None, :] < valid_len[:, None]).astype(jnp.float32)
    labels = jax.random.randint(k_lbl, (B,), 0, C)

    # Deterministic parameter init (xavier-style).
    # classifier: torch shape (FC, H), bias (FC,)  -> pass transposed (H, FC)
    wc = (jax.random.normal(k_wc, (H, FC), dtype=jnp.float32)
          * math.sqrt(2.0 / (H + FC)))
    bc = jnp.zeros((1, FC), dtype=jnp.float32)
    # ArcFace weight: torch shape (C, FC), xavier_uniform -> pass transposed (FC, C)
    limit = math.sqrt(6.0 / (C + FC))
    warc = jax.random.uniform(k_warc, (FC, C), dtype=jnp.float32,
                              minval=-limit, maxval=limit)

    logits, loss = shopee_forward(token_emb, attention_mask, labels,
                                  wc, bc, warc, class_tile=128)
    jax.block_until_ready((logits, loss))

    assert logits.shape == (B, C) and logits.dtype == jnp.float32
    assert bool(jnp.isfinite(loss))
    assert bool(jnp.all(jnp.isfinite(logits)))

    # Correctness check against a pure-JAX reference (generous tolerances:
    # only accumulation-order / rsqrt-approx differences expected).
    ref_logits, ref_loss = _reference(token_emb, attention_mask, labels,
                                      wc, bc, warc)
    assert float(jnp.max(jnp.abs(logits - ref_logits))) < 0.25
    assert abs(float(loss) - float(ref_loss)) < 0.02

    print("KERNEL_OK")
</pallas_src>

<mosaic_0001>
module attributes {stable_mosaic.version = 11 : i64} {
  func.func @_shopee_kernel(%arg0: i32, %arg1: memref<8x8x32xbf16, #tpu.memory_space<vmem>>, %arg2: memref<8x8xf32, #tpu.memory_space<vmem>>, %arg3: memref<8x1xi32, #tpu.memory_space<vmem>>, %arg4: memref<32x32xf32, #tpu.memory_space<vmem>>, %arg5: memref<1x32xf32, #tpu.memory_space<vmem>>, %arg6: memref<32x128xbf16, #tpu.memory_space<vmem>>, %arg7: memref<8x128xf32, #tpu.memory_space<vmem>>, %arg8: memref<1x1xf32, #tpu.memory_space<vmem>>, %arg9: memref<8x32xbf16, #tpu.memory_space<vmem>>, %arg10: memref<8x1xf32, #tpu.memory_space<vmem>>, %arg11: memref<8x1xf32, #tpu.memory_space<vmem>>, %arg12: memref<8x1xf32, #tpu.memory_space<vmem>>) attributes {dimension_semantics = [#tpu.dimension_semantics<arbitrary>], iteration_bounds = array<i64: 3>, scalar_prefetch = 0 : i64, scratch_operands = 4 : i64, tpu.core_type = #tpu.core_type<tc>, window_params = [{pipeline_mode = #tpu.pipeline_mode<synchronous>, transform_indices = @transform_0, window_bounds = array<i64: 8, 8, 32>}, {pipeline_mode = #tpu.pipeline_mode<synchronous>, transform_indices = @transform_1, window_bounds = array<i64: 8, 8>}, {pipeline_mode = #tpu.pipeline_mode<synchronous>, transform_indices = @transform_2, window_bounds = array<i64: 8, 1>}, {pipeline_mode = #tpu.pipeline_mode<synchronous>, transform_indices = @transform_3, window_bounds = array<i64: 32, 32>}, {pipeline_mode = #tpu.pipeline_mode<synchronous>, transform_indices = @transform_4, window_bounds = array<i64: 1, 32>}, {transform_indices = @transform_5, window_bounds = array<i64: 32, 128>}, {transform_indices = @transform_6, window_bounds = array<i64: 8, 128>}, {pipeline_mode = #tpu.pipeline_mode<synchronous>, transform_indices = @transform_7, window_bounds = array<i64: 1, 1>}]} {
    %c0_i32 = arith.constant 0 : i32
    %0 = arith.cmpi eq, %arg0, %c0_i32 : i32
    %1 = arith.extui %0 : i1 to i32
    %c0_i32_0 = arith.constant 0 : i32
    %2 = arith.cmpi ne, %1, %c0_i32_0 : i32
    scf.if %2 {
      %c0_35 = arith.constant 0 : index
      %c0_36 = arith.constant 0 : index
      %c0_37 = arith.constant 0 : index
      %73 = vector.load %arg1[%c0_35, %c0_36, %c0_37] : memref<8x8x32xbf16, #tpu.memory_space<vmem>>, vector<8x8x32xbf16>
      %74 = arith.extf %73 : vector<8x8x32xbf16> to vector<8x8x32xf32>
      %c0_38 = arith.constant 0 : index
      %c0_39 = arith.constant 0 : index
      %75 = vector.load %arg2[%c0_38, %c0_39] : memref<8x8xf32, #tpu.memory_space<vmem>>, vector<8x8xf32>
      %76 = vector.shape_cast %75 : vector<8x8xf32> to vector<8x8x1xf32>
      %77 = vector.broadcast %76 : vector<8x8x1xf32> to vector<8x8x32xf32>
      %78 = arith.mulf %74, %77 : vector<8x8x32xf32>
      %cst_40 = arith.constant dense<0.000000e+00> : vector<8x32xf32>
      %79 = vector.multi_reduction <add>, %78, %cst_40 [1] : vector<8x8x32xf32> to vector<8x32xf32>
      %cst_41 = arith.constant dense<0.000000e+00> : vector<8xf32>
      %80 = vector.multi_reduction <add>, %75, %cst_41 [1] : vector<8x8xf32> to vector<8xf32>
      %81 = vector.shape_cast %80 : vector<8xf32> to vector<8x1xf32>
      %cst_42 = arith.constant 9.99999971E-10 : f32
      %82 = vector.broadcast %cst_42 : f32 to vector<8x1xf32>
      %83 = arith.maximumf %81, %82 : vector<8x1xf32>
      %84 = vector.broadcast %83 : vector<8x1xf32> to vector<8x32xf32>
      %85 = arith.divf %79, %84 : vector<8x32xf32>
      %c0_43 = arith.constant 0 : index
      %c0_44 = arith.constant 0 : index
      %86 = vector.load %arg4[%c0_43, %c0_44] : memref<32x32xf32, #tpu.memory_space<vmem>>, vector<32x32xf32>
      %cst_45 = arith.constant dense<0.000000e+00> : vector<8x32xf32>
      %87 = tpu.matmul %85, %86, %cst_45 {dimension_numbers = #tpu.dot_dimension_numbers<[1], [0], [0], [1], [0, 0, 1, 1], [], []>} : vector<8x32xf32>, vector<32x32xf32>, vector<8x32xf32> -> vector<8x32xf32>
      %c0_46 = arith.constant 0 : index
      %c0_47 = arith.constant 0 : index
      %88 = vector.load %arg5[%c0_46, %c0_47] : memref<1x32xf32, #tpu.memory_space<vmem>>, vector<1x32xf32>
      %89 = vector.broadcast %88 : vector<1x32xf32> to vector<8x32xf32>
      %90 = arith.addf %87, %89 : vector<8x32xf32>
      %cst_48 = arith.constant dense<0.000000e+00> : vector<32xf32>
      %91 = vector.multi_reduction <add>, %90, %cst_48 [0] : vector<8x32xf32> to vector<32xf32>
      %92 = vector.shape_cast %91 : vector<32xf32> to vector<1x32xf32>
      %cst_49 = arith.constant 8.000000e+00 : f32
      %93 = vector.broadcast %cst_49 : f32 to vector<1x32xf32>
      %94 = arith.divf %92, %93 : vector<1x32xf32>
      %95 = vector.broadcast %94 : vector<1x32xf32> to vector<8x32xf32>
      %96 = arith.subf %90, %95 : vector<8x32xf32>
      %97 = vector.broadcast %94 : vector<1x32xf32> to vector<8x32xf32>
      %98 = arith.subf %90, %97 : vector<8x32xf32>
      %99 = arith.mulf %96, %98 : vector<8x32xf32>
      %cst_50 = arith.constant dense<0.000000e+00> : vector<32xf32>
      %100 = vector.multi_reduction <add>, %99, %cst_50 [0] : vector<8x32xf32> to vector<32xf32>
      %101 = vector.shape_cast %100 : vector<32xf32> to vector<1x32xf32>
      %cst_51 = arith.constant 8.000000e+00 : f32
      %102 = vector.broadcast %cst_51 : f32 to vector<1x32xf32>
      %103 = arith.divf %101, %102 : vector<1x32xf32>
      %104 = vector.broadcast %94 : vector<1x32xf32> to vector<8x32xf32>
      %105 = arith.subf %90, %104 : vector<8x32xf32>
      %cst_52 = arith.constant 9.99999974E-6 : f32
      %106 = vector.broadcast %cst_52 : f32 to vector<1x32xf32>
      %107 = arith.addf %103, %106 : vector<1x32xf32>
      %108 = math.rsqrt %107 : vector<1x32xf32>
      %109 = vector.broadcast %108 : vector<1x32xf32> to vector<8x32xf32>
      %110 = arith.mulf %105, %109 : vector<8x32xf32>
      %111 = arith.mulf %110, %110 : vector<8x32xf32>
      %cst_53 = arith.constant dense<0.000000e+00> : vector<8xf32>
      %112 = vector.multi_reduction <add>, %111, %cst_53 [1] : vector<8x32xf32> to vector<8xf32>
      %113 = vector.shape_cast %112 : vector<8xf32> to vector<8x1xf32>
      %cst_54 = arith.constant 1.000000e-24 : f32
      %114 = vector.broadcast %cst_54 : f32 to vector<8x1xf32>
      %115 = arith.maximumf %113, %114 : vector<8x1xf32>
      %116 = math.rsqrt %115 : vector<8x1xf32>
      %117 = vector.broadcast %116 : vector<8x1xf32> to vector<8x32xf32>
      %118 = arith.mulf %110, %117 : vector<8x32xf32>
      %119 = arith.truncf %118 : vector<8x32xf32> to vector<8x32xbf16>
      %c0_55 = arith.constant 0 : index
      %c0_56 = arith.constant 0 : index
      %120 = vector.load %arg9[%c0_55, %c0_56] : memref<8x32xbf16, #tpu.memory_space<vmem>>, vector<8x32xbf16>
      tpu.vector_store %arg9[%c0_55, %c0_56], %119 {strides = array<i32>} : memref<8x32xbf16, #tpu.memory_space<vmem>>, vector<8x32xbf16>,
      %cst_57 = arith.constant -1.000000e+30 : f32
      %121 = vector.broadcast %cst_57 : f32 to vector<8x1xf32>
      %c0_58 = arith.constant 0 : index
      %c0_59 = arith.constant 0 : index
      %122 = vector.load %arg10[%c0_58, %c0_59] : memref<8x1xf32, #tpu.memory_space<vmem>>, vector<8x1xf32>
      tpu.vector_store %arg10[%c0_58, %c0_59], %121 {strides = array<i32>} : memref<8x1xf32, #tpu.memory_space<vmem>>, vector<8x1xf32>,
      %cst_60 = arith.constant 0.000000e+00 : f32
      %123 = vector.broadcast %cst_60 : f32 to vector<8x1xf32>
      %c0_61 = arith.constant 0 : index
      %c0_62 = arith.constant 0 : index
      %124 = vector.load %arg11[%c0_61, %c0_62] : memref<8x1xf32, #tpu.memory_space<vmem>>, vector<8x1xf32>
      tpu.vector_store %arg11[%c0_61, %c0_62], %123 {strides = array<i32>} : memref<8x1xf32, #tpu.memory_space<vmem>>, vector<8x1xf32>,
      %cst_63 = arith.constant 0.000000e+00 : f32
      %125 = vector.broadcast %cst_63 : f32 to vector<8x1xf32>
      %c0_64 = arith.constant 0 : index
      %c0_65 = arith.constant 0 : index
      %126 = vector.load %arg12[%c0_64, %c0_65] : memref<8x1xf32, #tpu.memory_space<vmem>>, vector<8x1xf32>
      tpu.vector_store %arg12[%c0_64, %c0_65], %125 {strides = array<i32>} : memref<8x1xf32, #tpu.memory_space<vmem>>, vector<8x1xf32>,
    } else {
    }
    %c0 = arith.constant 0 : index
    %c0_1 = arith.constant 0 : index
    %3 = vector.load %arg6[%c0, %c0_1] : memref<32x128xbf16, #tpu.memory_space<vmem>>, vector<32x128xbf16>
    %4 = arith.extf %3 : vector<32x128xbf16> to vector<32x128xf32>
    %5 = arith.extf %3 : vector<32x128xbf16> to vector<32x128xf32>
    %6 = arith.mulf %4, %5 : vector<32x128xf32>
    %cst = arith.constant dense<0.000000e+00> : vector<128xf32>
    %7 = vector.multi_reduction <add>, %6, %cst [0] : vector<32x128xf32> to vector<128xf32>
    %8 = vector.shape_cast %7 : vector<128xf32> to vector<1x128xf32>
    %cst_2 = arith.constant 1.000000e-24 : f32
    %9 = vector.broadcast %cst_2 : f32 to vector<1x128xf32>
    %10 = arith.maximumf %8, %9 : vector<1x128xf32>
    %11 = math.rsqrt %10 : vector<1x128xf32>
    %c0_3 = arith.constant 0 : index
    %c0_4 = arith.constant 0 : index
    %12 = vector.load %arg9[%c0_3, %c0_4] : memref<8x32xbf16, #tpu.memory_space<vmem>>, vector<8x32xbf16>
    %cst_5 = arith.constant dense<0.000000e+00> : vector<8x128xf32>
    %13 = tpu.matmul %12, %3, %cst_5 {dimension_numbers = #tpu.dot_dimension_numbers<[1], [0], [0], [1], [0, 0, 1, 1], [], []>} : vector<8x32xbf16>, vector<32x128xbf16>, vector<8x128xf32> -> vector<8x128xf32>
    %14 = vector.broadcast %11 : vector<1x128xf32> to vector<8x128xf32>
    %15 = arith.mulf %13, %14 : vector<8x128xf32>
    %16 = arith.mulf %15, %15 : vector<8x128xf32>
    %cst_6 = arith.constant 1.000000e+00 : f32
    %17 = vector.broadcast %cst_6 : f32 to vector<8x128xf32>
    %18 = arith.subf %17, %16 : vector<8x128xf32>
    %cst_7 = arith.constant 0.000000e+00 : f32
    %19 = vector.broadcast %cst_7 : f32 to vector<8x128xf32>
    %20 = arith.maximumf %18, %19 : vector<8x128xf32>
    %21 = math.sqrt %20 : vector<8x128xf32>
    %cst_8 = arith.constant 0.825335621 : f32
    %22 = vector.broadcast %cst_8 : f32 to vector<8x128xf32>
    %23 = arith.mulf %15, %22 : vector<8x128xf32>
    %cst_9 = arith.constant 0.564642489 : f32
    %24 = vector.broadcast %cst_9 : f32 to vector<8x128xf32>
    %25 = arith.mulf %21, %24 : vector<8x128xf32>
    %26 = arith.subf %23, %25 : vector<8x128xf32>
    %cst_10 = arith.constant -0.825335621 : f32
    %27 = vector.broadcast %cst_10 : f32 to vector<8x128xf32>
    %28 = arith.cmpf ogt, %15, %27 : vector<8x128xf32>
    %cst_11 = arith.constant 0.33878547 : f32
    %29 = vector.broadcast %cst_11 : f32 to vector<8x128xf32>
    %30 = arith.subf %15, %29 : vector<8x128xf32>
    %31 = arith.select %28, %26, %30 : vector<8x128xi1>, vector<8x128xf32>
    %c128_i32 = arith.constant 128 : i32
    %32 = arith.muli %arg0, %c128_i32 : i32
    %33 = tpu.iota {dimensions = array<i32: 1>} : vector<8x128xi32>
    %34 = vector.broadcast %32 : i32 to vector<8x128xi32>
    %35 = arith.addi %34, %33 : vector<8x128xi32>
    %c0_12 = arith.constant 0 : index
    %c0_13 = arith.constant 0 : index
    %36 = vector.load %arg3[%c0_12, %c0_13] : memref<8x1xi32, #tpu.memory_space<vmem>>, vector<8x1xi32>
    %37 = vector.broadcast %36 : vector<8x1xi32> to vector<8x128xi32>
    %38 = arith.cmpi eq, %35, %37 : vector<8x128xi32>
    %39 = arith.select %38, %31, %15 : vector<8x128xi1>, vector<8x128xf32>
    %cst_14 = arith.constant 3.000000e+01 : f32
    %40 = vector.broadcast %cst_14 : f32 to vector<8x128xf32>
    %41 = arith.mulf %39, %40 : vector<8x128xf32>
    %c0_15 = arith.constant 0 : index
    %c0_16 = arith.constant 0 : index
    %42 = vector.load %arg7[%c0_15, %c0_16] : memref<8x128xf32, #tpu.memory_space<vmem>>, vector<8x128xf32>
    tpu.vector_store %arg7[%c0_15, %c0_16], %41 {strides = array<i32>} : memref<8x128xf32, #tpu.memory_space<vmem>>, vector<8x128xf32>,
    %c300_i32 = arith.constant 300 : i32
    %43 = vector.broadcast %c300_i32 : i32 to vector<8x128xi32>
    %44 = arith.cmpi slt, %35, %43 : vector<8x128xi32>
    %cst_17 = arith.constant -1.000000e+30 : f32
    %45 = vector.broadcast %cst_17 : f32 to vector<8x128xf32>
    %46 = arith.select %44, %41, %45 : vector<8x128xi1>, vector<8x128xf32>
    %c0_18 = arith.constant 0 : index
    %c0_19 = arith.constant 0 : index
    %47 = vector.load %arg10[%c0_18, %c0_19] : memref<8x1xf32, #tpu.memory_space<vmem>>, vector<8x1xf32>
    %cst_20 = arith.constant dense<0xFF800000> : vector<8xf32>
    %48 = vector.multi_reduction <maximumf>, %46, %cst_20 [1] : vector<8x128xf32> to vector<8xf32>
    %49 = vector.shape_cast %48 : vector<8xf32> to vector<8x1xf32>
    %50 = arith.maximumf %47, %49 : vector<8x1xf32>
    %51 = arith.subf %47, %50 : vector<8x1xf32>
    %52 = math.exp %51 : vector<8x1xf32>
    %c0_21 = arith.constant 0 : index
    %c0_22 = arith.constant 0 : index
    %53 = vector.load %arg11[%c0_21, %c0_22] : memref<8x1xf32, #tpu.memory_space<vmem>>, vector<8x1xf32>
    %54 = arith.mulf %52, %53 : vector<8x1xf32>
    %55 = vector.broadcast %50 : vector<8x1xf32> to vector<8x128xf32>
    %56 = arith.subf %46, %55 : vector<8x128xf32>
    %57 = math.exp %56 : vector<8x128xf32>
    %cst_23 = arith.constant dense<0.000000e+00> : vector<8xf32>
    %58 = vector.multi_reduction <add>, %57, %cst_23 [1] : vector<8x128xf32> to vector<8xf32>
    %59 = vector.shape_cast %58 : vector<8xf32> to vector<8x1xf32>
    %60 = arith.addf %54, %59 : vector<8x1xf32>
    %c0_24 = arith.constant 0 : index
    %c0_25 = arith.constant 0 : index
    %61 = vector.load %arg11[%c0_24, %c0_25] : memref<8x1xf32, #tpu.memory_space<vmem>>, vector<8x1xf32>
    tpu.vector_store %arg11[%c0_24, %c0_25], %60 {strides = array<i32>} : memref<8x1xf32, #tpu.memory_space<vmem>>, vector<8x1xf32>,
    %c0_26 = arith.constant 0 : index
    %c0_27 = arith.constant 0 : index
    %62 = vector.load %arg10[%c0_26, %c0_27] : memref<8x1xf32, #tpu.memory_space<vmem>>, vector<8x1xf32>
    tpu.vector_store %arg10[%c0_26, %c0_27], %50 {strides = array<i32>} : memref<8x1xf32, #tpu.memory_space<vmem>>, vector<8x1xf32>,
    %c0_28 = arith.constant 0 : index
    %c0_29 = arith.constant 0 : index
    %63 = vector.load %arg12[%c0_28, %c0_29] : memref<8x1xf32, #tpu.memory_space<vmem>>, vector<8x1xf32>
    %cst_30 = arith.constant 0.000000e+00 : f32
    %64 = vector.broadcast %cst_30 : f32 to vector<8x128xf32>
    %65 = arith.select %38, %41, %64 : vector<8x128xi1>, vector<8x128xf32>
    %cst_31 = arith.constant dense<0.000000e+00> : vector<8xf32>
    %66 = vector.multi_reduction <add>, %65, %cst_31 [1] : vector<8x128xf32> to vector<8xf32>
    %67 = vector.shape_cast %66 : vector<8xf32> to vector<8x1xf32>
    %68 = arith.addf %63, %67 : vector<8x1xf32>
    %c0_32 = arith.constant 0 : index
    %c0_33 = arith.constant 0 : index
    %69 = vector.load %arg12[%c0_32, %c0_33] : memref<8x1xf32, #tpu.memory_space<vmem>>, vector<8x1xf32>
    tpu.vector_store %arg12[%c0_32, %c0_33], %68 {strides = array<i32>} : memref<8x1xf32, #tpu.memory_space<vmem>>, vector<8x1xf32>,
    %c2_i32 = arith.constant 2 : i32
    %70 = arith.cmpi eq, %arg0, %c2_i32 : i32
    %71 = arith.extui %70 : i1 to i32
    %c0_i32_34 = arith.constant 0 : i32
    %72 = arith.cmpi ne, %71, %c0_i32_34 : i32
    scf.if %72 {
      %c0_35 = arith.constant 0 : index
      %c0_36 = arith.constant 0 : index
      %73 = vector.load %arg10[%c0_35, %c0_36] : memref<8x1xf32, #tpu.memory_space<vmem>>, vector<8x1xf32>
      %c0_37 = arith.constant 0 : index
      %c0_38 = arith.constant 0 : index
      %74 = vector.load %arg11[%c0_37, %c0_38] : memref<8x1xf32, #tpu.memory_space<vmem>>, vector<8x1xf32>
      %75 = math.log %74 : vector<8x1xf32>
      %76 = arith.addf %73, %75 : vector<8x1xf32>
      %c0_39 = arith.constant 0 : index
      %c0_40 = arith.constant 0 : index
      %77 = vector.load %arg12[%c0_39, %c0_40] : memref<8x1xf32, #tpu.memory_space<vmem>>, vector<8x1xf32>
      %78 = arith.subf %76, %77 : vector<8x1xf32>
      %cst_41 = arith.constant dense<0.000000e+00> : vector<1xf32>
      %79 = vector.multi_reduction <add>, %78, %cst_41 [0] : vector<8x1xf32> to vector<1xf32>
      %80 = vector.shape_cast %79 : vector<1xf32> to vector<1x1xf32>
      %cst_42 = arith.constant 1.250000e-01 : f32
      %81 = vector.broadcast %cst_42 : f32 to vector<1x1xf32>
      %82 = arith.mulf %80, %81 : vector<1x1xf32>
      %c0_43 = arith.constant 0 : index
      %c0_44 = arith.constant 0 : index
      %83 = vector.load %arg8[%c0_43, %c0_44] : memref<1x1xf32, #tpu.memory_space<vmem>>, vector<1x1xf32>
      tpu.vector_store %arg8[%c0_43, %c0_44], %82 {strides = array<i32>} : memref<1x1xf32, #tpu.memory_space<vmem>>, vector<1x1xf32>,
    } else {
    }
    return
  }
  func.func @transform_0(%arg0: i32) -> (i32, i32, i32) {
    %c0_i32 = arith.constant 0 : i32
    %c0_i32_0 = arith.constant 0 : i32
    %c0_i32_1 = arith.constant 0 : i32
    %c0_i32_2 = arith.constant 0 : i32
    return %c0_i32, %c0_i32_0, %c0_i32_1 : i32, i32, i32
  }
  func.func @transform_1(%arg0: i32) -> (i32, i32) {
    %c0_i32 = arith.constant 0 : i32
    %c0_i32_0 = arith.constant 0 : i32
    %c0_i32_1 = arith.constant 0 : i32
    return %c0_i32, %c0_i32_0 : i32, i32
  }
  func.func @transform_2(%arg0: i32) -> (i32, i32) {
    %c0_i32 = arith.constant 0 : i32
    %c0_i32_0 = arith.constant 0 : i32
    %c0_i32_1 = arith.constant 0 : i32
    return %c0_i32, %c0_i32_0 : i32, i32
  }
  func.func @transform_3(%arg0: i32) -> (i32, i32) {
    %c0_i32 = arith.constant 0 : i32
    %c0_i32_0 = arith.constant 0 : i32
    %c0_i32_1 = arith.constant 0 : i32
    return %c0_i32, %c0_i32_0 : i32, i32
  }
  func.func @transform_4(%arg0: i32) -> (i32, i32) {
    %c0_i32 = arith.constant 0 : i32
    %c0_i32_0 = arith.constant 0 : i32
    %c0_i32_1 = arith.constant 0 : i32
    return %c0_i32, %c0_i32_0 : i32, i32
  }
  func.func @transform_5(%arg0: i32) -> (i32, i32) {
    %c0_i32 = arith.constant 0 : i32
    %c0_i32_0 = arith.constant 0 : i32
    return %c0_i32, %arg0 : i32, i32
  }
  func.func @transform_6(%arg0: i32) -> (i32, i32) {
    %c0_i32 = arith.constant 0 : i32
    %c0_i32_0 = arith.constant 0 : i32
    return %c0_i32, %arg0 : i32, i32
  }
  func.func @transform_7(%arg0: i32) -> (i32, i32) {
    %c0_i32 = arith.constant 0 : i32
    %c0_i32_0 = arith.constant 0 : i32
    %c0_i32_1 = arith.constant 0 : i32
    return %c0_i32, %c0_i32_0 : i32, i32
  }
}

</mosaic_0001>

<bundles_post_ra>
// kernel: shopee_forward.1
= control target key start
LH: loop header
LB: loop body
LE: loop exit
PB: predicated region body
PF: predicated region fallthrough
CT: control target
= control target key end

     0   :  { %13 = vsyncpa [#allocation8], 0  ;;  %s1424_s0 = inlined_call_operand.vmem [shape: bf16[8,8,32], index: 0, kind: input, shape index: {}]   ;;  %s1425_s1 = inlined_call_operand.vmem [shape: f32[8,8], index: 1, kind: input, shape index: {}]   ;;  %s1426_s2 = inlined_call_operand.vmem [shape: s32[8,1], index: 2, kind: input, shape index: {}]   ;;  %s1427_s3 = inlined_call_operand.vmem [shape: f32[32,32], index: 3, kind: input, shape index: {}]   ;;  %s1428_s4 = inlined_call_operand.vmem [shape: f32[1,32], index: 4, kind: input, shape index: {}]   ;;  %s1429_s5 = inlined_call_operand.vmem [shape: bf16[32,384], index: 5, kind: input, shape index: {}]   ;;  %s1430_s6 = inlined_call_operand.hbm [shape: f32[8,384], index: 6, kind: output, shape index: {0}]   ;;  %s1431_s7 = inlined_call_operand.hbm [shape: f32[1,1], index: 7, kind: output, shape index: {1}]  }
   0x1   :  { %15 = vsyncpa [#allocation8 + $0x1], 0 }
   0x2   :  { %16 = vsyncpa [#allocation10], 0  ;;  %s1227_s24 = smov 0   ;;  %s1229_s25 = smov 0  }
   0x3   :  { %s1231_s26 = smov 0   ;;  %s1233_s27 = smov 0  }
   0x4 LB: > { %s1248_s28 = sadd.s32 4294967295, %s1176_s27   ;;  %s920_s29 = sadd.s32 4294967294, %s1176_s27   ;;  %s1176_s27 = sphi %s1233_s27, %s1437_s27   ;;  %s1172_s26 = sphi %s1231_s26, %s1436_s26   ;;  %s1168_s25 = sphi %s1229_s25, %s1435_s25   ;;  %s1164_s24 = sphi %s1227_s24, %s1434_s24  }
   0x5   : > { %s1252_s30 = sadd.s32 1, %s1176_s27   ;;  %s134_s8 = sadd.s32 1, %s1172_s26 }
   0x6   : > { %s131_s9 = ssub.s32 %s1176_s27, %s1252_s30  ;;  %p141_p0 = scmp.ne.s32.totalorder %s1172_s26, %s1168_s25 }
   0x7   : > { %p132_p1 = scmp.eq.s32.totalorder %s131_s9, 0  ;;  %p142_p2 = scmp.eq.s32.totalorder %s1176_s27, 0 }
   0x8   : > { %p171_p3 = scmp.eq.s32.totalorder %s1248_s28, 2  ;;  %p176_p4 = scmp.ne.s32.totalorder %s1168_s25, %s1164_s24 }
   0x9   : > { %s1264_s10 = scalar_select %p132_p1, %s1172_s26, %s134_s8  }
   0xa   : > { %p143_p5 = por %p142_p2, %p141_p0  ;;  %p1268_p6 = por %p171_p3, %p141_p0 }
   0xb   : > { %p177_p7 = scmp.eq.s32.totalorder %s920_s29, 2  ;;  %p922_p9 = scmp.ge.s32.totalorder %s1176_s27, 3 }
   0xd   : > { %p1272_p8 = por %p177_p7, %p176_p4  ;;  %229 = sbr.rel (%p922_p9) target bundleno = 27 (0x1b), region = 36 }
  0x14   : > { %232 = sbr.rel (!%p143_p5) target bundleno = 27 (0x1b), region = 40  ;;  %s234_s13 = sand.u32 (%p143_p5), 1, %s1172_s26  }
  0x15   : > { %s924_s14 = sshll.u32 (%p143_p5), %s1176_s27, 2  ;;  %s923_s15 = sshll.u32 (%p143_p5), %s234_s13, 4 }
  0x16   : > { %s238_s18 = scalar_lea.vmem (%p143_p5), %s1429_s5, %s924_s14  ;;  %s236_s19 = scalar_lea.vmem (%p143_p5), [#allocation6], %s923_s15 }
  0x17   : > { %v254_v0 = vld [vmem:[%s238_s18] sm:$0xf] (%p143_p5)  ;;  %v256_v1 = vld [vmem:[%s238_s18 + $0xc] sm:$0xf] (%p143_p5)  ;;  %v258_v2 = vld [vmem:[%s238_s18 + $0x18] sm:$0xf] (%p143_p5) }
  0x18   : > { %255 = vst [vmem:[%s236_s19] sm:$0xf] (%p143_p5), %v254_v0  ;;  %257 = vst [vmem:[%s236_s19 + $0x4] sm:$0xf] (%p143_p5), %v256_v1  ;;  %v260_v3 = vld [vmem:[%s238_s18 + $0x24] sm:$0xf] (%p143_p5) }
  0x19   : > { %259 = vst [vmem:[%s236_s19 + $0x8] sm:$0xf] (%p143_p5), %v258_v2  ;;  %261 = vst [vmem:[%s236_s19 + $0xc] sm:$0xf] (%p143_p5), %v260_v3 }
  0x1b PF: > { %p925_p10 = scmp.ge.s32.totalorder %s1176_s27, 1  ;;  %p291_p11 = scmp.lt.s32.totalorder %s1176_s27, 4 }
  0x1d   : > { %p292_p12 = pnand %p925_p10, %p291_p11 }
  0x1e   : > { %s1285_s20 = sand.u32 (!%p292_p12), 1, %s1168_s25   ;;  %p928_p13 = scmp.ne.s32.totalorder (!%p292_p12), %s1248_s28, 0 }
  0x1f   : > { %295 = sbr.rel (%p292_p12) target bundleno = 1411 (0x583), region = 81  ;;  %s926_s21 = sshll.u32 (!%p292_p12), %s1285_s20, 4 }
  0x20   : > { %s927_s22 = sshll.u32 (!%p292_p12), %s1285_s20, 3  ;;  %s1289_s23 = scalar_lea.vmem (!%p292_p12), [#allocation6], %s926_s21 }
  0x21   : > { %s1291_s29 = scalar_lea.vmem (!%p292_p12), [#allocation7], %s927_s22 }
  0x26   : > { %333 = sbr.rel (%p928_p13) target bundleno = 638 (0x27e), region = 89  ;;  %v350_v4 = vld [vmem:[%s1425_s1] sm:$0xff] (!%p928_p13)  ;;  %vm472_vm0 = vcmask (!%p928_p13), 64512   ;;  %v351_v5 = vlaneseq (!%p928_p13)  ;;  %v510_v25 = vld [vmem:[%s1427_s3 + $0x8] sm:$0xff] (!%p928_p13)  ;;  %v1178_v27 = vmov (!%p928_p13), 0.0|0.0   ;;  %v511_v28 = vld [vmem:[%s1427_s3 + $0x10] sm:$0xff] (!%p928_p13) }
  0x27   : > { %v473_v6 = vsel (!%p928_p13), %vm472_vm0, %v350_v4, 0.0  ;;  %v509_v24 = vld [vmem:[%s1427_s3] sm:$0xff] (!%p928_p13)  ;;  %989 = vmatprep.subr.bf16.mxu0 (!%p928_p13), %v1178_v27  ;;  %v512_v29 = vld [vmem:[%s1427_s3 + $0x18] sm:$0xff] (!%p928_p13)  ;;  %vm653_vm1 = vcmask (!%p928_p13), 7168   ;;  %vm1179_vm2 = vmmov (!%p928_p13), 0   ;;  %v1180_v31 = vmov (!%p928_p13), 0.0  }
  0x28   : > { %474 = vadd.xlane.f32.xlu0 (!%p928_p13), %v473_v6  ;;  %v352_v7 = vshrl.u32 (!%p928_p13), %v351_v5, 7  ;;  %v990_v26 = vpack.c.bf16 (!%p928_p13), %v510_v25, %v509_v24  ;;  %v993_v30 = vpack.c.bf16 (!%p928_p13), %v512_v29, %v511_v28  ;;  %978 = vmatprep.mubr.msk.f32.mxu0 (!%p928_p13), %vm1179_vm2, %v1180_v31  ;;  %655 = vst.msk [vmem:[#allocation4] sm:$0xff] (!%p928_p13), %vm653_vm1, %v1180_v31  ;;  %656 = vst.msk [vmem:[#allocation5] sm:$0xff] (!%p928_p13), %vm653_vm1, %v1180_v31  ;;  %v1181_v32 = vmov (!%p928_p13), -1e+30   ;;  %v959_v34 = vld [vmem:[%s1424_s0 + $0x8] sm:$0xff] (!%p928_p13)  }
  0x29   : > { %654 = vst.msk [vmem:[#allocation3] sm:$0xff] (!%p928_p13), %vm653_vm1, %v1181_v32  ;;  %v944_v36 = vld [vmem:[%s1424_s0] sm:$0xff] (!%p928_p13)   ;;  %v949_v37 = vunpack.c.l.bf16 (!%p928_p13), %v959_v34  ;;  %v960_v38 = vld [vmem:[%s1424_s0 + $0x10] sm:$0xff] (!%p928_p13)   ;;  %v950_v40 = vunpack.c.h.bf16 (!%p928_p13), %v959_v34  ;;  %vm415_vm3 = vcmask (!%p928_p13), 261120   ;;  %v961_v50 = vld [vmem:[%s1424_s0 + $0x18] sm:$0xff] (!%p928_p13)   ;;  %vm529_vm4 = vcmask (!%p928_p13), 1041409  }
  0x2a   : > { %v367_v8 = vsub.s32 (!%p928_p13), 2, %v352_v7  ;;  %v353_v9 = vsub.s32 (!%p928_p13), 0, %v352_v7  ;;  %v374_v12 = vsub.s32 (!%p928_p13), 3, %v352_v7  ;;  %v381_v14 = vsub.s32 (!%p928_p13), 4, %v352_v7  ;;  %991 = vmatpush3.bf16.msra.mxu0 (!%p928_p13), %v990_v26 }
  0x2b   : > { %v388_v16 = vsub.s32 (!%p928_p13), 5, %v352_v7  ;;  %v360_v17 = vsub.s32 (!%p928_p13), 1, %v352_v7  ;;  %v395_v19 = vsub.s32 (!%p928_p13), 6, %v352_v7  ;;  %v402_v22 = vsub.s32 (!%p928_p13), 7, %v352_v7  ;;  %992 = vmatprep.subr.bf16.mxu0 (!%p928_p13), %v1178_v27 }
  0x2c   : > { %v368_v10 = vrot.slane (!%p928_p13), %v350_v4, %v367_v8  ;;  %v354_v11 = vrot.slane (!%p928_p13), %v350_v4, %v353_v9  ;;  %v375_v13 = vrot.slane (!%p928_p13), %v350_v4, %v374_v12  ;;  %v382_v15 = vrot.slane (!%p928_p13), %v350_v4, %v381_v14 }
  0x2d   : > { %v389_v18 = vrot.slane %v350_v4, %v388_v16  ;;  %v361_v20 = vrot.slane %v350_v4, %v360_v17  ;;  %v396_v21 = vrot.slane %v350_v4, %v395_v19  ;;  %v403_v23 = vrot.slane %v350_v4, %v402_v22 }
  0x2e   : > { %370 = vbcast.lane.b32.xlu1 %v368_v10, 256  ;;  %994 = vmatpush3.bf16.msra.mxu0 %v993_v30  ;;  %v945_v39 = vunpack.c.l.bf16 %v944_v36  ;;  %v953_v42 = vunpack.c.l.bf16 %v960_v38  ;;  %v954_v48 = vunpack.c.h.bf16 %v960_v38  ;;  %v957_v57 = vunpack.c.l.bf16 %v961_v50 }
  0x2f   : > { %v958_v3 = vunpack.c.h.bf16 %v961_v50  ;;  %v946_v9 = vunpack.c.h.bf16 %v944_v36  ;;  %vm532_vm5 = vcmask 1042434   ;;  %vm535_vm6 = vcmask 1043459  }
  0x30   : > { %vm538_vm7 = vcmask 1044484   ;;  %vm541_vm8 = vcmask 1045509   ;;  %vm544_vm9 = vcmask 1046534   ;;  %vm547_vm10 = vcmask 1047559  }
  0x31   : > { %vm651_vm11 = vcmask 257024  }
  0x32   : > { %356 = vbcast.lane.b32.xlu1 %v354_v11, 256 }
  0x36   : > { %377 = vbcast.lane.b32.xlu1 %v375_v13, 256 }
  0x3a   : > { %384 = vbcast.lane.b32.xlu1 %v382_v15, 256 }
  0x3e   : > { %391 = vbcast.lane.b32.xlu1 %v389_v18, 256  ;;  %363 = vbcast.lane.b32.xlu0 %v361_v20, 256 }
  0x42   : > { %398 = vbcast.lane.b32.xlu1 %v396_v21, 256 }
  0x46   : > { %405 = vbcast.lane.b32.xlu1 %v403_v23, 256 }
  0xa0   : > { %v371_v33 = vpop.permute.xlu1 %370 }
  0xa1   : > { %v409_v43 = vmul.f32 %v949_v37, %v371_v33 }
  0xa3   : > { %v430_v49 = vsel %vm415_vm3, %v409_v43, 0.0 }
  0xa4   : > { %v357_v35 = vpop.permute.xlu1 %356  ;;  %v431_v55 = vrot.slane %v430_v49, 4 }
  0xa5   : > { %v407_v44 = vmul.f32 %v945_v39, %v357_v35 }
  0xa6   : > { %v432_v0 = vadd.f32 %v431_v55, %v430_v49 }
  0xa7   : > { %v416_v51 = vsel %vm415_vm3, %v407_v44, 0.0 }
  0xa8   : > { %v378_v41 = vpop.permute.xlu1 %377  ;;  %v417_v58 = vrot.slane %v416_v51, 4  ;;  %v433_v13 = vrot.slane %v432_v0, 2 }
  0xa9   : > { %v410_v45 = vmul.f32 %v950_v40, %v378_v41 }
  0xaa   : > { %v418_v4 = vadd.f32 %v417_v58, %v416_v51  ;;  %v434_v34 = vadd.f32 %v433_v13, %v432_v0 }
  0xab   : > { %v437_v52 = vsel %vm415_vm3, %v410_v45, 0.0 }
  0xac   : > { %v385_v46 = vpop.permute.xlu1 %384  ;;  %v438_v59 = vrot.slane %v437_v52, 4  ;;  %v419_v17 = vrot.slane %v418_v4, 2  ;;  %v435_v45 = vrot.slane %v434_v34, 1 }
  0xad   : > { %v411_v47 = vmul.f32 %v953_v42, %v385_v46 }
  0xae   : > { %v439_v5 = vadd.f32 %v438_v59, %v437_v52  ;;  %v420_v39 = vadd.f32 %v419_v17, %v418_v4 }
  0xaf   : > { %v444_v53 = vsel %vm415_vm3, %v411_v47, 0.0 }
  0xb0   : > { %v392_v54 = vpop.permute.xlu1 %391  ;;  %v445_v60 = vrot.slane %v444_v53, 4  ;;  %v440_v18 = vrot.slane %v439_v5, 2 }
  0xb1   : > { %v412_v56 = vmul.f32 %v954_v48, %v392_v54  ;;  %v421_v48 = vrot.slane %v420_v39, 1 }
  0xb2   : > { %v446_v7 = vadd.f32 %v445_v60, %v444_v53  ;;  %v441_v36 = vadd.f32 %v440_v18, %v439_v5 }
  0xb3   : > { %v451_v61 = vsel %vm415_vm3, %v412_v56, 0.0  ;;  %v436_v56 = vadd.f32 %v435_v45, %v434_v34 }
  0xb4   : > { %v452_v62 = vrot.slane %v451_v61, 4  ;;  %v399_v63 = vpop.permute.xlu1 %398  ;;  %v447_v21 = vrot.slane %v446_v7, 2  ;;  %v442_v46 = vrot.slane %v441_v36, 1 }
  0xb5   : > { %v413_v1 = vmul.f32 %v957_v57, %v399_v63  ;;  %v475_v2 = vpop.xlane.xlu0 %474 }
  0xb6   : > { %v476_v6 = vmax.f32 %v475_v2, 1e-09  ;;  %v453_v10 = vadd.f32 %v452_v62, %v451_v61  ;;  %v448_v40 = vadd.f32 %v447_v21, %v446_v7  ;;  %v443_v58 = vadd.f32 %v442_v46, %v441_v36 }
  0xb7   : > { %v458_v8 = vsel %vm415_vm3, %v413_v1, 0.0  ;;  %v422_v61 = vadd.f32 %v421_v48, %v420_v39 }
  0xb8   : > { %v459_v11 = vrot.slane %v458_v8, 4  ;;  %v406_v12 = vpop.permute.xlu1 %405  ;;  %v479_v16 = vrot.slane %v476_v6, 2  ;;  %v478_v20 = vrot.slane %v476_v6, 1  ;;  %v480_v24 = vrot.slane %v476_v6, 3 }
  0xb9   : > { %v414_v14 = vmul.f32 %v958_v3, %v406_v12  ;;  %v364_v15 = vpop.permute.xlu0 %363  ;;  %v454_v25 = vrot.slane %v453_v10, 2  ;;  %1048 = vrcp.f32 %v476_v6  ;;  %v481_v27 = vrot.slane %v476_v6, 4 }
  0xba   : > { %v460_v19 = vadd.f32 %v459_v11, %v458_v8  ;;  %v408_v23 = vmul.f32 %v946_v9, %v364_v15  ;;  %v482_v30 = vrot.slane %v476_v6, 5  ;;  %1050 = vrcp.f32 %v479_v16 }
  0xbb   : > { %v465_v22 = vsel %vm415_vm3, %v414_v14, 0.0  ;;  %1052 = vrcp.f32 %v478_v20  ;;  %v483_v33 = vrot.slane %v476_v6, 6  ;;  %v484_v35 = vrot.slane %v476_v6, 7 }
  0xbc   : > { %v466_v26 = vrot.slane %v465_v22, 4  ;;  %v461_v28 = vrot.slane %v460_v19, 2  ;;  %v423_v29 = vsel %vm415_vm3, %v408_v23, 0.0  ;;  %1054 = vrcp.f32 %v480_v24 }
  0xbd   : > { %v424_v32 = vrot.slane %v423_v29, 4  ;;  %1056 = vrcp.f32 %v481_v27  ;;  %v455_v42 = vadd.f32 %v454_v25, %v453_v10  ;;  %v449_v49 = vrot.slane %v448_v40, 1 }
  0xbe   : > { %v467_v31 = vadd.f32 %v466_v26, %v465_v22  ;;  %v462_v41 = vadd.f32 %v461_v28, %v460_v19  ;;  %1058 = vrcp.f32 %v482_v30  ;;  %v929_v28 = vld [vmem:[%s1428_s4] ss:$0 sm:$0xff] }
  0xbf   : > { %v425_v38 = vadd.f32 %v424_v32, %v423_v29  ;;  %1060 = vrcp.f32 %v483_v33  ;;  %v456_v52 = vrot.slane %v455_v42, 1  ;;  %v450_v62 = vadd.f32 %v449_v49, %v448_v40 }
  0xc0   : > { %v468_v37 = vrot.slane %v467_v31, 2  ;;  %1062 = vrcp.f32 %v484_v35  ;;  %v463_v50 = vrot.slane %v462_v41, 1 }
  0xc1   : > { %v426_v44 = vrot.slane %v425_v38, 2  ;;  %v457_v2 = vadd.f32 %v456_v52, %v455_v42 }
  0xc2   : > { %v469_v43 = vadd.f32 %v468_v37, %v467_v31  ;;  %v464_v63 = vadd.f32 %v463_v50, %v462_v41 }
  0xc3   : > { %v427_v47 = vadd.f32 %v426_v44, %v425_v38  ;;  %v1049_v51 = vpop.eup %1048 }
  0xc4   : > { %v470_v53 = vrot.slane %v469_v43, 1  ;;  %v1051_v55 = vpop.eup %1050  ;;  %v494_v9 = vmul.f32 %v1049_v51, %v422_v61 }
  0xc5   : > { %v428_v54 = vrot.slane %v427_v47, 1  ;;  %v1053_v57 = vpop.eup %1052  ;;  %v498_v0 = vmul.f32 %v1051_v55, %v436_v56 }
  0xc6   : > { %v1055_v60 = vpop.eup %1054  ;;  %v471_v3 = vadd.f32 %v470_v53, %v469_v43 }
  0xc7   : > { %v429_v59 = vadd.f32 %v428_v54, %v427_v47  ;;  %v1057_v1 = vpop.eup %1056  ;;  %v500_v5 = vmul.f32 %v1055_v60, %v443_v58  ;;  %v531_v14 = vrot.slane %v498_v0, 6 }
  0xc8   : > { %v1059_v6 = vpop.eup %1058  ;;  %v502_v7 = vmul.f32 %v1057_v1, %v450_v62 }
  0xc9   : > { %v496_v4 = vmul.f32 %v1053_v57, %v429_v59  ;;  %v1061_v8 = vpop.eup %1060  ;;  %v504_v11 = vmul.f32 %v1059_v6, %v457_v2  ;;  %v534_v17 = vrot.slane %v500_v5, 5 }
  0xca   : > { %v1063_v12 = vpop.eup %1062  ;;  %v506_v13 = vmul.f32 %v1061_v8, %v464_v63  ;;  %v537_v19 = vrot.slane %v502_v7, 4 }
  0xcb   : > { %v528_v10 = vrot.slane %v496_v4, 7  ;;  %v508_v16 = vmul.f32 %v1063_v12, %v471_v3  ;;  %v540_v21 = vrot.slane %v504_v11, 3 }
  0xcc   : > { %v543_v23 = vrot.slane %v506_v13, 2 }
  0xcd   : > { %v530_v15 = vsel %vm529_vm4, %v528_v10, %v494_v9  ;;  %v546_v25 = vrot.slane %v508_v16, 1 }
  0xce   : > { %v533_v18 = vsel %vm532_vm5, %v531_v14, %v530_v15 }
  0xcf   : > { %v536_v20 = vsel %vm535_vm6, %v534_v17, %v533_v18 }
  0xd0   : > { %v539_v22 = vsel %vm538_vm7, %v537_v19, %v536_v20 }
  0xd1   : > { %v542_v24 = vsel %vm541_vm8, %v540_v21, %v539_v22 }
  0xd2   : > { %v545_v26 = vsel %vm544_vm9, %v543_v23, %v542_v24 }
  0xd3   : > { %v548_v27 = vsel %vm547_vm10, %v546_v25, %v545_v26 }
  0xd4   : > { %979 = vmatmul.mubr.msk.f32.vlgmr.msra.gmra.mrb[0].mxu0 %vm415_vm3, %v548_v27 }
 0x1a7   : > { %v617_v29 = vpop.f32.mrb[0].mxu0 }
 0x1a8   : > { %v618_v30 = vadd.f32 %v929_v28, %v617_v29  ;;  %v980_v31 = vpop.f32.mrb[1].mxu0 }
 0x1aa   : > { %v621_v32 = vsel %vm415_vm3, %v618_v30, 0.0 }
 0x1ab   : > { %v622_v33 = vrot.slane %v621_v32, 4 }
 0x1ad   : > { %v623_v34 = vadd.f32 %v622_v33, %v621_v32 }
 0x1af   : > { %v624_v35 = vrot.slane %v623_v34, 2 }
 0x1b1   : > { %v625_v36 = vadd.f32 %v624_v35, %v623_v34 }
 0x1b3   : > { %v626_v37 = vrot.slane %v625_v36, 1 }
 0x1b5   : > { %v627_v38 = vadd.f32 %v626_v37, %v625_v36 }
 0x1b7   : > { %v629_v39 = vmul.f32 0.125, %v627_v38 }
 0x1b9   : > { %v630_v40 = vsub.f32 %v618_v30, %v629_v39 }
 0x1bb   : > { %v631_v41 = vmul.f32 %v630_v40, %v630_v40 }
 0x1bd   : > { %v632_v42 = vsel %vm415_vm3, %v631_v41, 0.0 }
 0x1be   : > { %v633_v43 = vrot.slane %v632_v42, 4 }
 0x1c0   : > { %v634_v44 = vadd.f32 %v633_v43, %v632_v42 }
 0x1c2   : > { %v635_v45 = vrot.slane %v634_v44, 2 }
 0x1c4   : > { %v636_v46 = vadd.f32 %v635_v45, %v634_v44 }
 0x1c6   : > { %v637_v47 = vrot.slane %v636_v46, 1 }
 0x1c8   : > { %v638_v48 = vadd.f32 %v637_v47, %v636_v46 }
 0x1ca   : > { %v639_v49 = vmul.f32 0.125, %v638_v48 }
 0x1cc   : > { %v640_v50 = vadd.f32 1e-05, %v639_v49 }
 0x1ce   : > { %1064 = vrsqrt.f32 %v640_v50 }
 0x1d8   : > { %v1065_v51 = vpop.eup %1064 }
 0x1d9   : > { %v642_v52 = vmul.f32 %v1065_v51, %v630_v40 }
 0x1db   : > { %v643_v53 = vmul.f32 %v642_v52, %v642_v52 }
 0x1dd   : > { %v644_v54 = vsel %vm415_vm3, %v643_v53, 0.0 }
 0x1de   : > { %645 = vadd.xlane.f32.xlu0 %v644_v54 }
 0x26b   : > { %v646_v55 = vpop.xlane.xlu0 %645 }
 0x26c   : > { %v647_v56 = vmax.f32 %v646_v55, 1e-24 }
 0x26e   : > { %1066 = vrsqrt.f32 %v647_v56 }
 0x278   : > { %v1067_v57 = vpop.eup %1066 }
 0x279   : > { %v649_v58 = vmul.f32 %v1067_v57, %v642_v52 }
 0x27b   : > { %v650_v59 = vpack.c.bf16 %v649_v58, %v649_v58 }
 0x27d   : > { %652 = vst.msk [vmem:[#allocation2] sm:$0xf] %vm651_vm11, %v650_v59 }
 0x27e PF: > { %v657_v60 = vld [vmem:[%s1289_s23] sm:$0xff]   ;;  %v659_v61 = vld [vmem:[%s1289_s23 + $0x8] sm:$0xff]   ;;  %v1182_v62 = vmov 0.0   ;;  %vm1183_vm12 = vmmov 0   ;;  %v1184_v7 = vmov 0   ;;  %vm693_vm13 = vcmask 261120  }
 0x27f   : > { %981 = vmatprep.subr.bf16.mxu0 %v1182_v62  ;;  %v661_v63 = vunpack.c.l.bf16 %v657_v60  ;;  %v662_v0 = vunpack.c.h.bf16 %v657_v60  ;;  %v663_v1 = vunpack.c.l.bf16 %v659_v61  ;;  %985 = vmatprep.mubr.msk.bf16.mxu0 %vm1183_vm12, %v1182_v62  ;;  %v759_v2 = vld [vmem:[%s1426_s2] sm:$0xff]  ;;  %v664_v3 = vunpack.c.h.bf16 %v659_v61  ;;  %s935_s23 = sshll.u32 %s1248_s28, 7  ;;  %p936_p0 = scmp.ne.s32.totalorder %s1248_s28, 2 }
 0x280   : > { %982 = vmatpush3.bf16.msra.mxu0 %v657_v60  ;;  %1068 = vset.pattern.permute.xlu0 %v1184_v7  ;;  %v755_v29 = vlaneseq  ;;  %v757_v32 = vstv %s935_s23  ;;  %vm789_vm3 = vcmask 7168   ;;  %v792_v51 = vld [vmem:[#allocation5] sm:$0xff]  ;;  %vm817_vm4 = vcmask (!%p936_p0), 0  }
 0x281   : > { %v665_v4 = vmul.f32 %v661_v63, %v661_v63  ;;  %v666_v5 = vmul.f32 %v662_v0, %v662_v0  ;;  %v667_v6 = vmul.f32 %v663_v1, %v663_v1  ;;  %983 = vmatprep.subr.bf16.mxu0 %v1182_v62  ;;  %761 = vperm.xlu0 %1068, %v759_v2   ;;  %v769_v48 = vld [vmem:[#allocation3] sm:$0xff] }
 0x282   : > { %v668_v9 = vmul.f32 %v664_v3, %v664_v3  ;;  %1069 = vset.pattern.permute.xlu1 %v1184_v7  ;;  %v756_v30 = vand.u32 127, %v755_v29 }
 0x283   : > { %v669_v8 = vadd.f32 %v666_v5, %v665_v4 }
 0x284   : > { %984 = vmatpush3.bf16.msra.mxu0 %v659_v61  ;;  %v680_v11 = vld [vmem:[#allocation2] sm:$0xf]  ;;  %v758_v36 = vadd.s32 %v757_v32, %v756_v30  ;;  %v776_v61 = vld [vmem:[#allocation4] sm:$0xff] }
 0x285   : > { %v670_v10 = vadd.f32 %v669_v8, %v667_v6 }
 0x286   : > { %vm767_vm2 = vcmp.lt.s32.totalorder %v758_v36, 300 }
 0x287   : > { %v671_v12 = vadd.f32 %v670_v10, %v668_v9  ;;  %986 = vmatmul.mubr.msk.bf16.vlgmr.msra.gmra.mrb[0].mxu0 %vm693_vm13, %v680_v11 }
 0x289   : > { %v672_v13 = vrot.slane %v671_v12, 4 }
 0x28b   : > { %v673_v14 = vadd.f32 %v672_v13, %v671_v12 }
 0x28d   : > { %v674_v15 = vrot.slane %v673_v14, 2 }
 0x28f   : > { %v675_v16 = vadd.f32 %v674_v15, %v673_v14 }
 0x291   : > { %v676_v17 = vrot.slane %v675_v16, 1 }
 0x293   : > { %v677_v18 = vadd.f32 %v676_v17, %v675_v16 }
 0x295   : > { %v678_v19 = vmax.f32 %v677_v18, 1e-24 }
 0x297   : > { %1074 = vrsqrt.f32 %v678_v19 }
 0x2a1   : > { %v1075_v20 = vpop.eup %1074 }
 0x300   : > { %v762_v37 = vpop.permute.xlu0 %761 }
 0x301   : > { %vm763_vm0 = vcmp.eq.s32.totalorder %v758_v36, %v762_v37 }
 0x35a   : > { %v731_v21 = vpop.f32.mrb[0].mxu0 }
 0x35b   : > { %v737_v22 = vmul.f32 %v1075_v20, %v731_v21  ;;  %v987_v23 = vpop.f32.mrb[1].mxu0 }
 0x35c   : > { %v734_v24 = vpop.f32.mrb[2].mxu0 }
 0x35d   : > { %v738_v25 = vmul.f32 %v737_v22, %v737_v22  ;;  %v988_v26 = vpop.f32.mrb[3].mxu0  ;;  %v748_v39 = vmul.f32 0.8253356, %v737_v22  ;;  %v934_v42 = vadd.f32 -0.33878547, %v737_v22 }
 0x35e   : > { %vm751_vm1 = vcmp.gt.f32.partialorder %v737_v22, -0.8253356 }
 0x35f   : > { %v739_v27 = vsub.f32 1.0, %v738_v25 }
 0x361   : > { %v740_v28 = vmax.f32 %v739_v27, 0.0 }
 0x363   : > { %1076 = vrsqrt.f32 %v740_v28  ;;  %vm743_vm14 = vcmp.eq.f32.partialorder %v740_v28, inf  ;;  %v746_v34 = vand.u32 2147483648, %v740_v28  ;;  %vm745_vm15 = vcmp.eq.f32.partialorder %v740_v28, 0.0 }
 0x36d   : > { %v1077_v31 = vpop.eup %1076 }
 0x36e   : > { %v742_v33 = vmul.f32 %v1077_v31, %v740_v28 }
 0x370   : > { %v744_v35 = vsel %vm743_vm14, %v740_v28, %v742_v33 }
 0x371   : > { %v747_v38 = vsel %vm745_vm15, %v746_v34, %v744_v35 }
 0x372   : > { %v749_v40 = vmul.f32 0.5646425, %v747_v38 }
 0x374   : > { %v750_v41 = vsub.f32 %v748_v39, %v749_v40 }
 0x376   : > { %v753_v43 = vsel %vm751_vm1, %v750_v41, %v934_v42 }
 0x377   : > { %v764_v44 = vsel %vm763_vm0, %v753_v43, %v737_v22 }
 0x378   : > { %v765_v45 = vmul.f32 30.0, %v764_v44 }
 0x37a   : > { %766 = vst [vmem:[%s1291_s29] sm:$0xff] %v765_v45  ;;  %v768_v46 = vsel %vm767_vm2, %v765_v45, -1e+30  ;;  %v793_v47 = vsel %vm763_vm0, %v765_v45, 0.0 }
 0x37b   : > { %770 = vmax.xlane.f32.xlu0 %v768_v46 }
 0x37f   : > { %794 = vadd.xlane.f32.xlu0 %v793_v47 }
 0x408   : > { %v771_v49 = vpop.xlane.xlu0 %770 }
 0x409   : > { %v772_v50 = vmax.f32 %v769_v48, %v771_v49 }
 0x40b   : > { %v773_v52 = vsub.f32 %v769_v48, %v772_v50  ;;  %791 = vst.msk [vmem:[#allocation3] sm:$0xff] %vm789_vm3, %v772_v50  ;;  %780 = vperm.xlu1 %1069, %v772_v50  }
 0x40c   : > { %v795_v53 = vpop.xlane.xlu0 %794 }
 0x40d   : > { %v796_v54 = vadd.f32 %v795_v53, %v792_v51  ;;  %v774_v59 = vmul.f32 1.442695, %v773_v52 }
 0x40f   : > { %797 = vst.msk [vmem:[#allocation5] sm:$0xff] %vm789_vm3, %v796_v54 }
 0x412   : > { %v802_v3 = vld [vmem:[#allocation3] sm:$0xff] (!%p936_p0) }
 0x416   : > { %v807_v5 = vld [vmem:[#allocation5] sm:$0xff] (!%p936_p0) }
 0x48a   : > { %v781_v55 = vpop.permute.xlu1 %780 }
 0x48b   : > { %v783_v56 = vsub.f32 %v768_v46, %v781_v55 }
 0x48d   : > { %v784_v57 = vmul.f32 1.442695, %v783_v56 }
 0x48f   : > { %1078 = vpow2.f32 %v784_v57 }
 0x490   : > { %1080 = vpow2.f32 %v774_v59 }
 0x499   : > { %v1079_v58 = vpop.eup %1078 }
 0x49a   : > { %786 = vadd.xlane.f32.xlu1 %v1079_v58  ;;  %v1081_v60 = vpop.eup %1080 }
 0x49b   : > { %v777_v62 = vmul.f32 %v1081_v60, %v776_v61 }
 0x524   : > { %801 = sbr.rel (%p936_p0) target bundleno = 1363 (0x553), region = 93 }
 0x527   : > { %v787_v63 = vpop.xlane.xlu1 %786 }
 0x528   : > { %v788_v0 = vadd.f32 %v787_v63, %v777_v62 }
 0x52a   : > { %790 = vst.msk [vmem:[#allocation4] sm:$0xff] %vm789_vm3, %v788_v0 }
 0x531   : > { %v803_v1 = vld [vmem:[#allocation4] sm:$0xff] }
 0x532   : > { %1082 = vlog2.f32 %v803_v1 }
 0x53c   : > { %v1083_v2 = vpop.eup %1082 }
 0x53d   : > { %v805_v4 = vmul.f32 0.6931472, %v1083_v2 }
 0x53f   : > { %v806_v6 = vadd.f32 %v805_v4, %v802_v3 }
 0x541   : > { %v808_v7 = vsub.f32 %v806_v6, %v807_v5 }
 0x543   : > { %v809_v8 = vsel %vm789_vm3, %v808_v7, 0.0 }
 0x544   : > { %v810_v9 = vrot.slane %v809_v8, 4 }
 0x546   : > { %v811_v10 = vadd.f32 %v810_v9, %v809_v8 }
 0x548   : > { %v812_v11 = vrot.slane %v811_v10, 2 }
 0x54a   : > { %v813_v12 = vadd.f32 %v812_v11, %v811_v10 }
 0x54c   : > { %v814_v13 = vrot.slane %v813_v12, 1 }
 0x54e   : > { %v815_v14 = vadd.f32 %v814_v13, %v813_v12 }
 0x550   : > { %v816_v15 = vmul.f32 0.125, %v815_v14 }
 0x552   : > { %818 = vst.msk [vmem:[#allocation9] sm:$0x1] %vm817_vm4, %v816_v15 }
 0x553 PF: > { %s1355_s13 = scalar_lea.hbm %s1430_s6, %s935_s23  ;;  %s833_s14 = sshll.u32 %s1291_s29, 4  ;;  %s1358_s14 = int_to_ptr.vmem [resolvable:$true] %s833_s14 }
 0x554   : > { %s1185_s15 = smov [#allocation9]   ;;  %s820_s17 = scalar_lea.sflag [#allocation8], %s1285_s20 }
 0x555   : > { %s1360_s16 = sshll.u32 %s1185_s15, 4  ;;  %s1084_s18 = scalar_lea.vmem %s1358_s14, 128  ;;  %s845_s16 = int_to_ptr.vmem [resolvable:$true] %s1360_s16 }
 0x556   : > { %p1085_p1 = scmp.ne.s32.totalorder %s1358_s14, %s1084_s18  ;;  %s1186_s19 = smov [#allocation7]  }
 0x557   : > { %s1088_s21 = sshll.u32 %s1186_s19, 4  ;;  %s1089_s21 = int_to_ptr.vmem [resolvable:$false] %s1088_s21 }
 0x558   : > { %p1086_p2 = pnand %p1085_p1, %p1268_p6  ;;  %s1090_s22 = scalar_lea.vmem %s1089_s21, 256 }
 0x559   : > { %p1091_p5 = scmp.lt.s32.totalorder %s1358_s14, %s1089_s21  ;;  %p1092_p7 = scmp.lt.s32.totalorder %s1090_s22, %s1084_s18 }
 0x55a   : > { %p1087_p4 = pneg %p1086_p2 }
 0x55b   : > { %p1093_p9 = por %p1092_p7, %p1091_p5 }
 0x55d   : > { %p1094_p10 = pnand %p1093_p9, %p1087_p4 }
 0x55f   : > { %1097 = shalt.err (!%p1094_p10)
}
 0x560   : > { %s1098_s20 = scalar_lea.hbm %s1355_s13, 128  ;;  %s1102_s8 = scalar_lea.hbm %s1430_s6, 384 }
 0x561   : > { %p1099_p11 = scmp.ne.s32.totalorder %s1355_s13, %s1098_s20  ;;  %p1103_p0 = scmp.lt.u32.totalorder %s1355_s13, %s1430_s6 }
 0x562   : > { %p1104_p1 = scmp.lt.u32.totalorder %s1102_s8, %s1098_s20  ;;  %p1106_p4 = scmp.lt.u32.totalorder %s1098_s20, %s1355_s13 }
 0x563   : > { %p1100_p12 = pnand %p1099_p11, %p1268_p6 }
 0x564   : > { %p1105_p2 = por %p1104_p1, %p1103_p0 }
 0x565   : > { %p1101_p13 = pneg %p1100_p12 }
 0x566   : > { %p1107_p5 = por %p1106_p4, %p1105_p2 }
 0x568   : > { %p1108_p7 = pnand %p1107_p5, %p1101_p13 }
 0x56a   : > { %1111 = shalt.err (!%p1108_p7)
}
 0x56b   : > { %995 = dma.vmem_to_hbm [thread:$0]  (%p1268_p6), %s1358_s14, 128, %s1355_s13, %s820_s17  }
 0x56c   : > { %s1112_s18 = scalar_lea.vmem %s845_s16, 16  ;;  %s1118_s19 = scalar_lea.vmem %s845_s16, 32 }
 0x56d   : > { %p1113_p9 = scmp.ne.s32.totalorder %s845_s16, %s1112_s18  ;;  %p1119_p12 = scmp.lt.s32.totalorder %s845_s16, %s845_s16 }
 0x56e   : > { %p1120_p0 = scmp.lt.s32.totalorder %s1118_s19, %s1112_s18 }
 0x56f   : > { %p1114_p10 = pnand %p1113_p9, %p171_p3 }
 0x570   : > { %p1121_p1 = por %p1120_p0, %p1119_p12 }
 0x571   : > { %p1115_p11 = pneg %p1114_p10 }
 0x573   : > { %p1122_p2 = pnand %p1121_p1, %p1115_p11 }
 0x575   : > { %1125 = shalt.err (!%p1122_p2)
}
 0x576   : > { %s1126_s11 = scalar_lea.hbm %s1431_s7, 16 }
 0x577   : > { %p1127_p6 = scmp.ne.s32.totalorder %s1431_s7, %s1126_s11  ;;  %p1132_p5 = scmp.lt.u32.totalorder %s1126_s11, %s1431_s7 }
 0x579   : > { %p1128_p13 = pnand %p1127_p6, %p171_p3 }
 0x57b   : > { %p1129_p4 = pneg %p1128_p13 }
 0x57d   : > { %p1134_p7 = pnand %p1132_p5, %p1129_p4 }
 0x57f   : > { %1137 = shalt.err (!%p1134_p7)
}
 0x580   : > { %997 = dma.vmem_to_hbm [thread:$0]  (%p171_p3), %s845_s16, 16, %s1431_s7, [#allocation10]  }
 0x581   : > { %1155 = dma.done.wait (%p171_p3), [#allocation10], 16  }
 0x582   : > { %1157 = vsyncadd (%p171_p3), [#allocation10], 4294967280 }
 0x583 PF: > { %p1007_p9 = scmp.ge.s32.totalorder %s1176_s27, 2  ;;  %s860_s8 = sand.u32 1, %s1164_s24  }
 0x584   : > { %s861_s9 = scalar_lea.sflag [#allocation8], %s860_s8 }
 0x585   : > { %p1002_p10 = pnand %p1007_p9, %p1272_p8 }
 0x587   : > { %1159 = dma.done.wait (!%p1002_p10), %s861_s9, 128  }
 0x588   : > { %1161 = vsyncadd (!%p1002_p10), %s861_s9, 4294967168  ;;  %p19_p11 = scmp.ge.s32.totalorder %s1252_s30, 5   ;;  %s1434_s24 = smov %s1168_s25 }
 0x589   : > { %s1435_s25 = smov %s1172_s26  ;;  %s1436_s26 = smov %s1264_s10 }
 0x58a   : > { %s1437_s27 = smov %s1252_s30  ;;  %21 = sbr.rel (!%p19_p11) target bundleno = 4 (0x4), region = 141 }
 0x591   :  { %866 = vsyncpa [#allocation8], 1 }
 0x592   :  { %868 = vsyncpa [#allocation8 + $0x1], 1 }
 0x593   :  { %869 = vsyncpa [#allocation10], 1 }

</bundles_post_ra>
